<compile_context>
chip_gen: v7x
topology: tpu7x:2x2x1
jax: 0.10.0
libtpu: 0.0.40
codegen_flags: <defaults>
</compile_context>

<pallas_src>
import jax
import jax.numpy as jnp
from jax.experimental import pallas as pl
from jax.experimental.pallas import tpu as pltpu

BN_EPS = 1e-5
LANE = 128
SUBLANE = 8


def _round_up(n, m):
    return ((n + m - 1) // m) * m


def _pad2d(a, rows, cols):
    return jnp.pad(a, ((0, rows - a.shape[0]), (0, cols - a.shape[1])))


# --------------------------------------------------------------------------
# Fused kernel
# --------------------------------------------------------------------------
def _make_fused_decoder_kernel(num_hidden):
    """Whole-decoder kernel: num_hidden x (Linear+foldedBN+ReLU) + output Linear.

    Ref order: x, (w1, b1), ..., (wN, bN), (w_out, b_out), o.
    Weights are bf16, biases f32; matmuls accumulate in f32 on the MXU.
    """
    def kernel(*refs):
        x_ref = refs[0]
        o_ref = refs[-1]
        params = refs[1:-1]

        h = x_ref[...].astype(jnp.bfloat16)
        idx = 0
        for _ in range(num_hidden):
            w = params[idx][...]
            b = params[idx + 1][...]
            idx += 2
            z = jnp.dot(h, w, preferred_element_type=jnp.float32) + b
            # Dropout is identity in eval mode; activation = ReLU.
            h = jnp.maximum(z, 0.0).astype(jnp.bfloat16)

        w_out = params[idx][...]
        b_out = params[idx + 1][...]
        o_ref[...] = jnp.dot(h, w_out, preferred_element_type=jnp.float32) + b_out

    return kernel


# --------------------------------------------------------------------------
# Parameter construction / BN folding / padding
# --------------------------------------------------------------------------
def init_decoder_params(key, latent_dim, hidden_layer_sizes,
                        n_features, num_classes):
    """Synthetic PyTorch-like parameters (unfolded, unpadded, f32).

    Linear weights are stored transposed relative to torch ([in, out]) so the
    kernel computes x @ W directly. BN vectors are [1, H] rows.
    """
    params = {"hidden": [], "out": None}
    in_dim = latent_dim
    for h in hidden_layer_sizes:
        key, kw, kb, kg, kbt, km, kv = jax.random.split(key, 7)
        bound = 1.0 / jnp.sqrt(jnp.float32(in_dim))
        w = jax.random.uniform(kw, (in_dim, h), jnp.float32, -bound, bound)
        b = jax.random.uniform(kb, (1, h), jnp.float32, -bound, bound)
        gamma = 1.0 + 0.1 * jax.random.normal(kg, (1, h), jnp.float32)
        beta = 0.1 * jax.random.normal(kbt, (1, h), jnp.float32)
        mean = 0.1 * jax.random.normal(km, (1, h), jnp.float32)
        var = jnp.abs(1.0 + 0.1 * jax.random.normal(kv, (1, h), jnp.float32))
        params["hidden"].append((w, b, gamma, beta, mean, var))
        in_dim = h
    key, kw, kb = jax.random.split(key, 3)
    out_dim = n_features * num_classes
    bound = 1.0 / jnp.sqrt(jnp.float32(in_dim))
    w_out = jax.random.uniform(kw, (in_dim, out_dim), jnp.float32, -bound, bound)
    b_out = jax.random.uniform(kb, (1, out_dim), jnp.float32, -bound, bound)
    params["out"] = (w_out, b_out)
    return params


def prepare_fused_params(params, latent_dim):
    """Fold eval-mode BN into Linear, zero-pad lane dims to 128, cast W to bf16."""
    flat = []
    in_pad = _round_up(latent_dim, LANE)
    first_in_pad = in_pad
    for (w, b, gamma, beta, mean, var) in params["hidden"]:
        h = w.shape[1]
        h_pad = _round_up(h, LANE)
        scale = gamma * jax.lax.rsqrt(var + BN_EPS)           # (1, h)
        w_f = w * scale                                       # scale each output col
        b_f = (b - mean) * scale + beta
        flat.append(_pad2d(w_f, in_pad, h_pad).astype(jnp.bfloat16))
        flat.append(_pad2d(b_f, 1, h_pad).astype(jnp.float32))
        in_pad = h_pad
    w_out, b_out = params["out"]
    o_pad = _round_up(w_out.shape[1], LANE)
    flat.append(_pad2d(w_out, in_pad, o_pad).astype(jnp.bfloat16))
    flat.append(_pad2d(b_out, 1, o_pad).astype(jnp.float32))
    return {
        "flat": flat,
        "num_hidden": len(params["hidden"]),
        "in_pad": first_in_pad,
        "out_pad": o_pad,
    }


# --------------------------------------------------------------------------
# Wrapper
# --------------------------------------------------------------------------
def decoder_forward(fused, x, n_features, num_classes):
    """Full Decoder forward pass (eval mode) in one pallas_call."""
    B = x.shape[0]
    L_pad = fused["in_pad"]
    O = n_features * num_classes
    O_pad = fused["out_pad"]
    flat = fused["flat"]

    # Batch tiling: sublane-aligned tiles; 256-row tiles for large batches so
    # v7x megacore / pipelining have work per grid step.
    tm = 256 if B >= 256 else _round_up(B, SUBLANE)
    B_pad = _round_up(B, tm)

    x_p = _pad2d(x.astype(jnp.float32), B_pad, L_pad)

    kernel = _make_fused_decoder_kernel(fused["num_hidden"])

    def whole(shape):
        return pl.BlockSpec(shape, lambda i, _s=shape: (0,) * len(_s))

    in_specs = [pl.BlockSpec((tm, L_pad), lambda i: (i, 0))]
    for arr in flat:
        in_specs.append(whole(arr.shape))
    out_specs = pl.BlockSpec((tm, O_pad), lambda i: (i, 0))

    out_p = pl.pallas_call(
        kernel,
        out_shape=jax.ShapeDtypeStruct((B_pad, O_pad), jnp.float32),
        grid=(B_pad // tm,),
        in_specs=in_specs,
        out_specs=out_specs,
        compiler_params=pltpu.CompilerParams(
            dimension_semantics=("parallel",),
            vmem_limit_bytes=64 * 1024 * 1024,
        ),
    )(x_p, *flat)

    out = out_p[:B, :O]
    # x.view(-1, n_features, num_classes) — done in plain JAX on the sliced result.
    return out.reshape(-1, n_features, num_classes)


# --------------------------------------------------------------------------
# References for correctness checks
# --------------------------------------------------------------------------
def decoder_reference_f32(params, x, n_features, num_classes):
    """Original unfolded f32 math: Linear -> BN(eval) -> ReLU ... -> Linear."""
    h = x
    for (w, b, gamma, beta, mean, var) in params["hidden"]:
        h = h @ w + b
        h = (h - mean) * jax.lax.rsqrt(var + BN_EPS) * gamma + beta
        h = jnp.maximum(h, 0.0)
    w_out, b_out = params["out"]
    out = h @ w_out + b_out
    return out.reshape(-1, n_features, num_classes)


def decoder_reference_bf16path(fused, x, n_features, num_classes):
    """Mirrors the kernel's math exactly: folded BN, bf16 operands, f32 accum."""
    L_pad = fused["in_pad"]
    h = _pad2d(x.astype(jnp.float32), x.shape[0], L_pad).astype(jnp.bfloat16)
    flat = fused["flat"]
    idx = 0
    for _ in range(fused["num_hidden"]):
        w, b = flat[idx], flat[idx + 1]
        idx += 2
        z = jnp.dot(h, w, preferred_element_type=jnp.float32) + b
        h = jnp.maximum(z, 0.0).astype(jnp.bfloat16)
    w_out, b_out = flat[idx], flat[idx + 1]
    out = jnp.dot(h, w_out, preferred_element_type=jnp.float32) + b_out
    O = n_features * num_classes
    return out[:, :O].reshape(-1, n_features, num_classes)


if __name__ == "__main__":
    # Small shapes consistent with the module's forward.
    batch = 8
    latent_dim = 16
    hidden_layer_sizes = [32, 64]
    n_features = 8
    num_classes = 4
    dropout_rate = 0.2  # identity in eval mode

    key = jax.random.PRNGKey(0)
    key, kx, kp = jax.random.split(key, 3)
    x = jax.random.normal(kx, (batch, latent_dim), jnp.float32)
    params = init_decoder_params(kp, latent_dim, hidden_layer_sizes,
                                 n_features, num_classes)
    fused = prepare_fused_params(params, latent_dim)

    out = decoder_forward(fused, x, n_features, num_classes)
    out = jax.block_until_ready(out)

    assert out.shape == (batch, n_features, num_classes), out.shape

    # Tight check against the exact same numerical path (bf16 MXU, folded BN).
    ref_bf16 = decoder_reference_bf16path(fused, x, n_features, num_classes)
    assert jnp.allclose(out, ref_bf16, atol=1e-3, rtol=1e-3), \
        "mismatch vs bf16-path reference"

    # Sanity check against the original unfolded f32 math (loose tol for bf16).
    ref_f32 = decoder_reference_f32(params, x, n_features, num_classes)
    assert jnp.allclose(out, ref_f32, atol=5e-2, rtol=5e-2), \
        "mismatch vs f32 reference"

    print("KERNEL_OK")
</pallas_src>

<mosaic_0001>
module attributes {stable_mosaic.version = 11 : i64} {
  func.func @kernel(%arg0: i32, %arg1: memref<8x128xf32, #tpu.memory_space<vmem>>, %arg2: memref<128x128xbf16, #tpu.memory_space<vmem>>, %arg3: memref<1x128xf32, #tpu.memory_space<vmem>>, %arg4: memref<128x128xbf16, #tpu.memory_space<vmem>>, %arg5: memref<1x128xf32, #tpu.memory_space<vmem>>, %arg6: memref<128x128xbf16, #tpu.memory_space<vmem>>, %arg7: memref<1x128xf32, #tpu.memory_space<vmem>>, %arg8: memref<8x128xf32, #tpu.memory_space<vmem>>) attributes {dimension_semantics = [#tpu.dimension_semantics<parallel>], iteration_bounds = array<i64: 1>, scalar_prefetch = 0 : i64, scratch_operands = 0 : i64, tpu.core_type = #tpu.core_type<tc>, window_params = [{transform_indices = @transform_0, window_bounds = array<i64: 8, 128>}, {pipeline_mode = #tpu.pipeline_mode<synchronous>, transform_indices = @transform_1, window_bounds = array<i64: 128, 128>}, {pipeline_mode = #tpu.pipeline_mode<synchronous>, transform_indices = @transform_2, window_bounds = array<i64: 1, 128>}, {pipeline_mode = #tpu.pipeline_mode<synchronous>, transform_indices = @transform_3, window_bounds = array<i64: 128, 128>}, {pipeline_mode = #tpu.pipeline_mode<synchronous>, transform_indices = @transform_4, window_bounds = array<i64: 1, 128>}, {pipeline_mode = #tpu.pipeline_mode<synchronous>, transform_indices = @transform_5, window_bounds = array<i64: 128, 128>}, {pipeline_mode = #tpu.pipeline_mode<synchronous>, transform_indices = @transform_6, window_bounds = array<i64: 1, 128>}, {transform_indices = @transform_7, window_bounds = array<i64: 8, 128>}]} {
    %c0 = arith.constant 0 : index
    %c0_0 = arith.constant 0 : index
    %0 = vector.load %arg1[%c0, %c0_0] : memref<8x128xf32, #tpu.memory_space<vmem>>, vector<8x128xf32>
    %1 = arith.truncf %0 : vector<8x128xf32> to vector<8x128xbf16>
    %c0_1 = arith.constant 0 : index
    %c0_2 = arith.constant 0 : index
    %2 = vector.load %arg2[%c0_1, %c0_2] : memref<128x128xbf16, #tpu.memory_space<vmem>>, vector<128x128xbf16>
    %c0_3 = arith.constant 0 : index
    %c0_4 = arith.constant 0 : index
    %3 = vector.load %arg3[%c0_3, %c0_4] : memref<1x128xf32, #tpu.memory_space<vmem>>, vector<1x128xf32>
    %cst = arith.constant dense<0.000000e+00> : vector<8x128xf32>
    %4 = tpu.matmul %1, %2, %cst {dimension_numbers = #tpu.dot_dimension_numbers<[1], [0], [0], [1], [0, 0, 1, 1], [], []>} : vector<8x128xbf16>, vector<128x128xbf16>, vector<8x128xf32> -> vector<8x128xf32>
    %5 = vector.broadcast %3 : vector<1x128xf32> to vector<8x128xf32>
    %6 = arith.addf %4, %5 : vector<8x128xf32>
    %cst_5 = arith.constant 0.000000e+00 : f32
    %7 = vector.broadcast %cst_5 : f32 to vector<8x128xf32>
    %8 = arith.maximumf %6, %7 : vector<8x128xf32>
    %9 = arith.truncf %8 : vector<8x128xf32> to vector<8x128xbf16>
    %c0_6 = arith.constant 0 : index
    %c0_7 = arith.constant 0 : index
    %10 = vector.load %arg4[%c0_6, %c0_7] : memref<128x128xbf16, #tpu.memory_space<vmem>>, vector<128x128xbf16>
    %c0_8 = arith.constant 0 : index
    %c0_9 = arith.constant 0 : index
    %11 = vector.load %arg5[%c0_8, %c0_9] : memref<1x128xf32, #tpu.memory_space<vmem>>, vector<1x128xf32>
    %cst_10 = arith.constant dense<0.000000e+00> : vector<8x128xf32>
    %12 = tpu.matmul %9, %10, %cst_10 {dimension_numbers = #tpu.dot_dimension_numbers<[1], [0], [0], [1], [0, 0, 1, 1], [], []>} : vector<8x128xbf16>, vector<128x128xbf16>, vector<8x128xf32> -> vector<8x128xf32>
    %13 = vector.broadcast %11 : vector<1x128xf32> to vector<8x128xf32>
    %14 = arith.addf %12, %13 : vector<8x128xf32>
    %cst_11 = arith.constant 0.000000e+00 : f32
    %15 = vector.broadcast %cst_11 : f32 to vector<8x128xf32>
    %16 = arith.maximumf %14, %15 : vector<8x128xf32>
    %17 = arith.truncf %16 : vector<8x128xf32> to vector<8x128xbf16>
    %c0_12 = arith.constant 0 : index
    %c0_13 = arith.constant 0 : index
    %18 = vector.load %arg6[%c0_12, %c0_13] : memref<128x128xbf16, #tpu.memory_space<vmem>>, vector<128x128xbf16>
    %c0_14 = arith.constant 0 : index
    %c0_15 = arith.constant 0 : index
    %19 = vector.load %arg7[%c0_14, %c0_15] : memref<1x128xf32, #tpu.memory_space<vmem>>, vector<1x128xf32>
    %cst_16 = arith.constant dense<0.000000e+00> : vector<8x128xf32>
    %20 = tpu.matmul %17, %18, %cst_16 {dimension_numbers = #tpu.dot_dimension_numbers<[1], [0], [0], [1], [0, 0, 1, 1], [], []>} : vector<8x128xbf16>, vector<128x128xbf16>, vector<8x128xf32> -> vector<8x128xf32>
    %21 = vector.broadcast %19 : vector<1x128xf32> to vector<8x128xf32>
    %22 = arith.addf %20, %21 : vector<8x128xf32>
    %c0_17 = arith.constant 0 : index
    %c0_18 = arith.constant 0 : index
    %23 = vector.load %arg8[%c0_17, %c0_18] : memref<8x128xf32, #tpu.memory_space<vmem>>, vector<8x128xf32>
    tpu.vector_store %arg8[%c0_17, %c0_18], %22 {strides = array<i32>} : memref<8x128xf32, #tpu.memory_space<vmem>>, vector<8x128xf32>,
    return
  }
  func.func @transform_0(%arg0: i32) -> (i32, i32) {
    %c0_i32 = arith.constant 0 : i32
    %c0_i32_0 = arith.constant 0 : i32
    return %arg0, %c0_i32 : i32, i32
  }
  func.func @transform_1(%arg0: i32) -> (i32, i32) {
    %c0_i32 = arith.constant 0 : i32
    %c0_i32_0 = arith.constant 0 : i32
    %c0_i32_1 = arith.constant 0 : i32
    return %c0_i32, %c0_i32_0 : i32, i32
  }
  func.func @transform_2(%arg0: i32) -> (i32, i32) {
    %c0_i32 = arith.constant 0 : i32
    %c0_i32_0 = arith.constant 0 : i32
    %c0_i32_1 = arith.constant 0 : i32
    return %c0_i32, %c0_i32_0 : i32, i32
  }
  func.func @transform_3(%arg0: i32) -> (i32, i32) {
    %c0_i32 = arith.constant 0 : i32
    %c0_i32_0 = arith.constant 0 : i32
    %c0_i32_1 = arith.constant 0 : i32
    return %c0_i32, %c0_i32_0 : i32, i32
  }
  func.func @transform_4(%arg0: i32) -> (i32, i32) {
    %c0_i32 = arith.constant 0 : i32
    %c0_i32_0 = arith.constant 0 : i32
    %c0_i32_1 = arith.constant 0 : i32
    return %c0_i32, %c0_i32_0 : i32, i32
  }
  func.func @transform_5(%arg0: i32) -> (i32, i32) {
    %c0_i32 = arith.constant 0 : i32
    %c0_i32_0 = arith.constant 0 : i32
    %c0_i32_1 = arith.constant 0 : i32
    return %c0_i32, %c0_i32_0 : i32, i32
  }
  func.func @transform_6(%arg0: i32) -> (i32, i32) {
    %c0_i32 = arith.constant 0 : i32
    %c0_i32_0 = arith.constant 0 : i32
    %c0_i32_1 = arith.constant 0 : i32
    return %c0_i32, %c0_i32_0 : i32, i32
  }
  func.func @transform_7(%arg0: i32) -> (i32, i32) {
    %c0_i32 = arith.constant 0 : i32
    %c0_i32_0 = arith.constant 0 : i32
    return %arg0, %c0_i32 : i32, i32
  }
}

</mosaic_0001>

<bundles_post_ra>
// kernel: tpu_custom_call.1
= control target key start
LH: loop header
LB: loop body
LE: loop exit
PB: predicated region body
PF: predicated region fallthrough
CT: control target
= control target key end

     0   :  { %12 = vsyncpa [#allocation3], 0  ;;  %s996_s0 = inlined_call_operand.hbm [shape: f32[8,128], index: 0, kind: input, shape index: {}]   ;;  %s997_s1 = inlined_call_operand.hbm [shape: bf16[128,128], index: 1, kind: input, shape index: {}]   ;;  %s998_s2 = inlined_call_operand.hbm [shape: f32[1,128], index: 2, kind: input, shape index: {}]   ;;  %s999_s3 = inlined_call_operand.hbm [shape: bf16[128,128], index: 3, kind: input, shape index: {}]   ;;  %s1000_s4 = inlined_call_operand.hbm [shape: f32[1,128], index: 4, kind: input, shape index: {}]   ;;  %s1001_s5 = inlined_call_operand.hbm [shape: bf16[128,128], index: 5, kind: input, shape index: {}]   ;;  %s1002_s6 = inlined_call_operand.hbm [shape: f32[1,128], index: 6, kind: input, shape index: {}]   ;;  %s1003_s7 = inlined_call_operand.hbm [shape: f32[8,128], index: 7, kind: output, shape index: {}]  }
   0x1   :  { %13 = vsyncpa [#allocation6], 0 }
   0x2   :  { %14 = vsyncpa [#allocation9], 0 }
   0x3   :  { %15 = vsyncpa [#allocation12], 0 }
   0x4   :  { %16 = vsyncpa [#allocation4], 0  ;;  %s809_s24 = smov [#allocation5]   ;;  %s623_s28 = scalar_lea.hbm %s997_s1, 1024 }
   0x5   :  { %s32_s25 = sshll.u32 %s809_s24, 4  ;;  %p624_p0 = scmp.ne.s32.totalorder %s997_s1, %s623_s28  ;;  %s33_s25 = int_to_ptr.vmem [resolvable:$true] %s32_s25 }
   0x6   :  { %p627_p1 = scmp.lt.u32.totalorder %s623_s28, %s997_s1 }
   0x8   :  { %p629_p2 = pnand %p627_p1, %p624_p0 }
   0xa   :  { %632 = shalt.err (!%p629_p2)
}
   0xb   :  { %s633_s10 = scalar_lea.vmem %s33_s25, 1024  ;;  %p638_p4 = scmp.lt.s32.totalorder %s33_s25, %s33_s25 }
   0xc   :  { %p634_p3 = scmp.ne.s32.totalorder %s33_s25, %s633_s10  ;;  %p639_p5 = scmp.lt.s32.totalorder %s633_s10, %s633_s10 }
   0xe   :  { %p640_p6 = por %p639_p5, %p638_p4 }
  0x10   :  { %p641_p7 = pnand %p640_p6, %p634_p3 }
  0x12   :  { %644 = shalt.err (!%p641_p7)
}
  0x13   :  { %s810_s11 = smov 64   ;;  %s811_s12 = smov 4  }
  0x14   :  { %38 = dma.hbm_to_vmem [thread:$0]  %s997_s1, 1024, %s33_s25, [#allocation6], %s810_s11, %s810_s11, %s811_s12  }
  0x15   :  { %s812_s15 = smov [#allocation8]   ;;  %s813_s17 = smov [#allocation11]  }
  0x16   :  { %s54_s16 = sshll.u32 %s812_s15, 4  ;;  %s76_s18 = sshll.u32 %s813_s17, 4  ;;  %s55_s16 = int_to_ptr.vmem [resolvable:$true] %s54_s16  ;;  %s77_s18 = int_to_ptr.vmem [resolvable:$true] %s76_s18 }
  0x17   :  { %s645_s21 = scalar_lea.hbm %s999_s3, 1024 }
  0x18   :  { %p646_p8 = scmp.ne.s32.totalorder %s999_s3, %s645_s21  ;;  %p649_p9 = scmp.lt.u32.totalorder %s645_s21, %s999_s3 }
  0x1a   :  { %p651_p10 = pnand %p649_p9, %p646_p8 }
  0x1c   :  { %654 = shalt.err (!%p651_p10)
}
  0x1d   :  { %s655_s1 = scalar_lea.vmem %s55_s16, 1024  ;;  %p660_p12 = scmp.lt.s32.totalorder %s55_s16, %s55_s16 }
  0x1e   :  { %p656_p11 = scmp.ne.s32.totalorder %s55_s16, %s655_s1  ;;  %p661_p13 = scmp.lt.s32.totalorder %s655_s1, %s655_s1 }
  0x20   :  { %p662_p0 = por %p661_p13, %p660_p12 }
  0x22   :  { %p663_p1 = pnand %p662_p0, %p656_p11 }
  0x24   :  { %666 = shalt.err (!%p663_p1)
}
  0x25   :  { %60 = dma.hbm_to_vmem [thread:$0]  %s999_s3, 1024, %s55_s16, [#allocation9], %s810_s11, %s810_s11, %s811_s12  }
  0x26   :  { %s667_s30 = scalar_lea.hbm %s1001_s5, 1024 }
  0x27   :  { %p668_p2 = scmp.ne.s32.totalorder %s1001_s5, %s667_s30  ;;  %p671_p3 = scmp.lt.u32.totalorder %s667_s30, %s1001_s5 }
  0x29   :  { %p673_p4 = pnand %p671_p3, %p668_p2 }
  0x2b   :  { %676 = shalt.err (!%p673_p4)
}
  0x2c   :  { %s677_s14 = scalar_lea.vmem %s77_s18, 1024  ;;  %p682_p6 = scmp.lt.s32.totalorder %s77_s18, %s77_s18 }
  0x2d   :  { %p678_p5 = scmp.ne.s32.totalorder %s77_s18, %s677_s14  ;;  %p683_p7 = scmp.lt.s32.totalorder %s677_s14, %s677_s14 }
  0x2f   :  { %p684_p8 = por %p683_p7, %p682_p6 }
  0x31   :  { %p685_p9 = pnand %p684_p8, %p678_p5 }
  0x33   :  { %688 = shalt.err (!%p685_p9)
}
  0x34   :  { %82 = dma.hbm_to_vmem [thread:$0]  %s1001_s5, 1024, %s77_s18, [#allocation12], %s810_s11, %s810_s11, %s811_s12  }
  0x35   :  { %s814_s16 = smov [#allocation2]   ;;  %s815_s19 = smov [#allocation7]  }
  0x36   :  { %s23_s17 = sshll.u32 %s814_s16, 4  ;;  %s45_s20 = sshll.u32 %s815_s19, 4  ;;  %s24_s17 = int_to_ptr.vmem [resolvable:$true] %s23_s17  ;;  %s46_s20 = int_to_ptr.vmem [resolvable:$true] %s45_s20 }
  0x37   :  { %s689_s23 = scalar_lea.hbm %s996_s0, 128 }
  0x38   :  { %p690_p10 = scmp.ne.s32.totalorder %s996_s0, %s689_s23  ;;  %p693_p11 = scmp.lt.u32.totalorder %s689_s23, %s996_s0 }
  0x3a   :  { %p695_p12 = pnand %p693_p11, %p690_p10 }
  0x3c   :  { %698 = shalt.err (!%p695_p12)
}
  0x3d   :  { %s699_s5 = scalar_lea.vmem %s24_s17, 128  ;;  %p704_p0 = scmp.lt.s32.totalorder %s24_s17, %s24_s17 }
  0x3e   :  { %p700_p13 = scmp.ne.s32.totalorder %s24_s17, %s699_s5  ;;  %p705_p1 = scmp.lt.s32.totalorder %s699_s5, %s699_s5 }
  0x40   :  { %p706_p2 = por %p705_p1, %p704_p0 }
  0x42   :  { %p707_p3 = pnand %p706_p2, %p700_p13 }
  0x44   :  { %710 = shalt.err (!%p707_p3)
}
  0x45   :  { %26 = dma.hbm_to_vmem [thread:$0]  %s996_s0, 128, %s24_s17, [#allocation3]  }
  0x46   :  { %s711_s28 = scalar_lea.hbm %s998_s2, 16 }
  0x47   :  { %p712_p4 = scmp.ne.s32.totalorder %s998_s2, %s711_s28  ;;  %p715_p5 = scmp.lt.u32.totalorder %s711_s28, %s998_s2 }
  0x49   :  { %p717_p6 = pnand %p715_p5, %p712_p4 }
  0x4b   :  { %720 = shalt.err (!%p717_p6)
}
  0x4c   :  { %s721_s10 = scalar_lea.vmem %s46_s20, 16  ;;  %s725_s13 = scalar_lea.vmem %s46_s20, 32 }
  0x4d   :  { %p722_p7 = scmp.ne.s32.totalorder %s46_s20, %s721_s10  ;;  %p726_p8 = scmp.lt.s32.totalorder %s46_s20, %s46_s20 }
  0x4e   :  { %p727_p9 = scmp.lt.s32.totalorder %s725_s13, %s721_s10 }
  0x50   :  { %p728_p10 = por %p727_p9, %p726_p8 }
  0x52   :  { %p729_p11 = pnand %p728_p10, %p722_p7 }
  0x54   :  { %732 = shalt.err (!%p729_p11)
}
  0x55   :  { %48 = dma.hbm_to_vmem [thread:$0]  %s998_s2, 16, %s46_s20, [#allocation6]  }
  0x56   :  { %s816_s3 = smov [#allocation10]   ;;  %s817_s16 = smov [#allocation13]  }
  0x57   :  { %s67_s15 = sshll.u32 %s816_s3, 4  ;;  %s89_s17 = sshll.u32 %s817_s16, 4  ;;  %s68_s15 = int_to_ptr.vmem [resolvable:$true] %s67_s15  ;;  %s90_s17 = int_to_ptr.vmem [resolvable:$true] %s89_s17 }
  0x58   :  { %s733_s22 = scalar_lea.hbm %s1000_s4, 16 }
  0x59   :  { %p734_p12 = scmp.ne.s32.totalorder %s1000_s4, %s733_s22  ;;  %p737_p13 = scmp.lt.u32.totalorder %s733_s22, %s1000_s4 }
  0x5b   :  { %p739_p0 = pnand %p737_p13, %p734_p12 }
  0x5d   :  { %742 = shalt.err (!%p739_p0)
}
  0x5e   :  { %s743_s2 = scalar_lea.vmem %s68_s15, 16  ;;  %s747_s20 = scalar_lea.vmem %s68_s15, 32 }
  0x5f   :  { %p744_p1 = scmp.ne.s32.totalorder %s68_s15, %s743_s2  ;;  %p748_p2 = scmp.lt.s32.totalorder %s68_s15, %s68_s15 }
  0x60   :  { %p749_p3 = scmp.lt.s32.totalorder %s747_s20, %s743_s2 }
  0x62   :  { %p750_p4 = por %p749_p3, %p748_p2 }
  0x64   :  { %p751_p5 = pnand %p750_p4, %p744_p1 }
  0x66   :  { %754 = shalt.err (!%p751_p5)
}
  0x67   :  { %70 = dma.hbm_to_vmem [thread:$0]  %s1000_s4, 16, %s68_s15, [#allocation9]  }
  0x68   :  { %s755_s18 = scalar_lea.hbm %s1002_s6, 16 }
  0x69   :  { %p756_p6 = scmp.ne.s32.totalorder %s1002_s6, %s755_s18  ;;  %p759_p7 = scmp.lt.u32.totalorder %s755_s18, %s1002_s6 }
  0x6b   :  { %p761_p8 = pnand %p759_p7, %p756_p6 }
  0x6d   :  { %764 = shalt.err (!%p761_p8)
}
  0x6e   :  { %s765_s8 = scalar_lea.vmem %s90_s17, 16  ;;  %s769_s9 = scalar_lea.vmem %s90_s17, 32 }
  0x6f   :  { %p766_p9 = scmp.ne.s32.totalorder %s90_s17, %s765_s8  ;;  %p770_p10 = scmp.lt.s32.totalorder %s90_s17, %s90_s17 }
  0x70   :  { %p771_p11 = scmp.lt.s32.totalorder %s769_s9, %s765_s8 }
  0x72   :  { %p772_p12 = por %p771_p11, %p770_p10 }
  0x74   :  { %p773_p13 = pnand %p772_p12, %p766_p9 }
  0x76   :  { %776 = shalt.err (!%p773_p13)
}
  0x77   :  { %92 = dma.hbm_to_vmem [thread:$0]  %s1002_s6, 16, %s90_s17, [#allocation12]  }
  0x78   :  { %799 = dma.done.wait [#allocation3], 128  }
  0x79   :  { %800 = vsyncadd [#allocation3], 4294967168 }
  0x7a   :  { %801 = dma.done.wait [#allocation6], 1040  }
  0x7b   :  { %802 = vsyncadd [#allocation6], 4294966256 }
  0x7c   :  { %803 = dma.done.wait [#allocation9], 1040  }
  0x7d   :  { %804 = vsyncadd [#allocation9], 4294966256 }
  0x7e   :  { %805 = dma.done.wait [#allocation12], 1040  }
  0x7f   :  { %806 = vsyncadd [#allocation12], 4294966256  ;;  %v818_v0 = vmov 0.0   ;;  %vm819_vm0 = vmmov 0   ;;  %v599_v1 = vld [vmem:[#allocation5] sm:$0xff]   ;;  %v600_v2 = vld [vmem:[#allocation5 + $0x8] sm:$0xff]  }
  0x80   :  { %527 = vmatprep.subr.bf16.mxu0 %v818_v0  ;;  %543 = vmatprep.mubr.msk.bf16.mxu0 %vm819_vm0, %v818_v0  ;;  %v601_v3 = vld [vmem:[#allocation5 + $0x10] sm:$0xff]   ;;  %v607_v4 = vld [vmem:[#allocation8] sm:$0xff]   ;;  %v602_v5 = vld [vmem:[#allocation5 + $0x18] sm:$0xff]   ;;  %s820_s6 = smov [#allocation14]  }
  0x81   :  { %547 = vmatprep.subr.bf16.mxu1 %v818_v0  ;;  %563 = vmatprep.mubr.msk.bf16.mxu1 %vm819_vm0, %v818_v0  ;;  %v608_v6 = vld [vmem:[#allocation8 + $0x8] sm:$0xff]   ;;  %v603_v7 = vld [vmem:[#allocation5 + $0x20] sm:$0xff]   ;;  %v609_v8 = vld [vmem:[#allocation8 + $0x10] sm:$0xff]   ;;  %s461_s13 = sshll.u32 %s820_s6, 4  ;;  %s462_s13 = int_to_ptr.vmem [resolvable:$true] %s461_s13 }
  0x82   :  { %528 = vmatpush3.bf16.msra.mxu0 %v599_v1  ;;  %548 = vmatpush3.bf16.msra.mxu1 %v607_v4  ;;  %v604_v9 = vld [vmem:[#allocation5 + $0x28] sm:$0xff]   ;;  %v610_v10 = vld [vmem:[#allocation8 + $0x18] sm:$0xff]   ;;  %v605_v11 = vld [vmem:[#allocation5 + $0x30] sm:$0xff]   ;;  %s777_s0 = scalar_lea.vmem %s462_s13, 128  ;;  %p782_p1 = scmp.lt.s32.totalorder %s462_s13, %s462_s13 }
  0x83   :  { %529 = vmatprep.subr.bf16.mxu0 %v818_v0  ;;  %549 = vmatprep.subr.bf16.mxu1 %v818_v0  ;;  %v611_v12 = vld [vmem:[#allocation8 + $0x20] sm:$0xff]   ;;  %v606_v13 = vld [vmem:[#allocation5 + $0x38] sm:$0xff]   ;;  %v612_v15 = vld [vmem:[#allocation8 + $0x28] sm:$0xff]   ;;  %p778_p0 = scmp.ne.s32.totalorder %s462_s13, %s777_s0  ;;  %p783_p2 = scmp.lt.s32.totalorder %s777_s0, %s777_s0 }
  0x84   :  { %v115_v14 = vld [vmem:[#allocation2] sm:$0xff]  ;;  %v615_v19 = vld [vmem:[#allocation11] sm:$0xff]   ;;  %v616_v20 = vld [vmem:[#allocation11 + $0x8] sm:$0xff]  }
  0x85   :  { %v116_v16 = vpack.c.bf16 %v115_v14, %v115_v14  ;;  %v613_v17 = vld [vmem:[#allocation8 + $0x30] sm:$0xff]   ;;  %v614_v18 = vld [vmem:[#allocation8 + $0x38] sm:$0xff]   ;;  %v619_v23 = vld [vmem:[#allocation11 + $0x20] sm:$0xff]   ;;  %p784_p3 = por %p783_p2, %p782_p1 }
  0x86   :  { %530 = vmatpush3.bf16.msra.mxu0 %v600_v2  ;;  %550 = vmatpush3.bf16.msra.mxu1 %v608_v6  ;;  %v617_v21 = vld [vmem:[#allocation11 + $0x10] sm:$0xff]   ;;  %v618_v22 = vld [vmem:[#allocation11 + $0x18] sm:$0xff]   ;;  %v620_v24 = vld [vmem:[#allocation11 + $0x28] sm:$0xff]  }
  0x87   :  { %531 = vmatprep.subr.bf16.mxu0 %v818_v0  ;;  %551 = vmatprep.subr.bf16.mxu1 %v818_v0  ;;  %v473_v25 = vld [vmem:[#allocation7] ss:$0 sm:$0xff]  ;;  %v621_v33 = vld [vmem:[#allocation11 + $0x30] sm:$0xff]   ;;  %v482_v35 = vld [vmem:[#allocation10] ss:$0 sm:$0xff]  ;;  %p785_p4 = pnand %p784_p3, %p778_p0 }
  0x88   :  { %v622_v34 = vld [vmem:[#allocation11 + $0x38] sm:$0xff]   ;;  %v491_v43 = vld [vmem:[#allocation13] ss:$0 sm:$0xff] }
  0x8a   :  { %532 = vmatpush3.bf16.msra.mxu0 %v601_v3  ;;  %552 = vmatpush3.bf16.msra.mxu1 %v609_v8 }
  0x8b   :  { %533 = vmatprep.subr.bf16.mxu0 %v818_v0  ;;  %553 = vmatprep.subr.bf16.mxu1 %v818_v0 }
  0x8e   :  { %534 = vmatpush3.bf16.msra.mxu0 %v602_v5  ;;  %554 = vmatpush3.bf16.msra.mxu1 %v610_v10 }
  0x8f   :  { %535 = vmatprep.subr.bf16.mxu0 %v818_v0  ;;  %555 = vmatprep.subr.bf16.mxu1 %v818_v0 }
  0x92   :  { %536 = vmatpush3.bf16.msra.mxu0 %v603_v7  ;;  %556 = vmatpush3.bf16.msra.mxu1 %v611_v12 }
  0x93   :  { %537 = vmatprep.subr.bf16.mxu0 %v818_v0  ;;  %557 = vmatprep.subr.bf16.mxu1 %v818_v0 }
  0x96   :  { %538 = vmatpush3.bf16.msra.mxu0 %v604_v9  ;;  %558 = vmatpush3.bf16.msra.mxu1 %v612_v15 }
  0x97   :  { %539 = vmatprep.subr.bf16.mxu0 %v818_v0  ;;  %559 = vmatprep.subr.bf16.mxu1 %v818_v0 }
  0x9a   :  { %540 = vmatpush3.bf16.msra.mxu0 %v605_v11  ;;  %560 = vmatpush3.bf16.msra.mxu1 %v613_v17 }
  0x9b   :  { %541 = vmatprep.subr.bf16.mxu0 %v818_v0  ;;  %561 = vmatprep.subr.bf16.mxu1 %v818_v0 }
  0x9e   :  { %542 = vmatpush3.bf16.msra.mxu0 %v606_v13  ;;  %562 = vmatpush3.bf16.msra.mxu1 %v614_v18 }
  0x9f   :  { %567 = vmatprep.subr.bf16.mxu0 %v818_v0 }
  0xa1   :  { %544 = vmatmul.mubr.bf16.vlgmr.msra.gmra.mrb[0].mxu0 %v116_v16 }
  0xa2   :  { %583 = vmatprep.mubr.msk.bf16.mxu0 %vm819_vm0, %v818_v0  ;;  %568 = vmatpush3.bf16.msra.mxu0 %v615_v19 }
  0xa3   :  { %569 = vmatprep.subr.bf16.mxu0 %v818_v0 }
  0xa6   :  { %570 = vmatpush3.bf16.msra.mxu0 %v616_v20 }
  0xa7   :  { %571 = vmatprep.subr.bf16.mxu0 %v818_v0 }
  0xaa   :  { %572 = vmatpush3.bf16.msra.mxu0 %v617_v21 }
  0xab   :  { %573 = vmatprep.subr.bf16.mxu0 %v818_v0 }
  0xae   :  { %574 = vmatpush3.bf16.msra.mxu0 %v618_v22 }
  0xaf   :  { %575 = vmatprep.subr.bf16.mxu0 %v818_v0 }
  0xb2   :  { %576 = vmatpush3.bf16.msra.mxu0 %v619_v23 }
  0xb3   :  { %577 = vmatprep.subr.bf16.mxu0 %v818_v0 }
  0xb6   :  { %578 = vmatpush3.bf16.msra.mxu0 %v620_v24 }
  0xb7   :  { %579 = vmatprep.subr.bf16.mxu0 %v818_v0 }
  0xba   :  { %580 = vmatpush3.bf16.msra.mxu0 %v621_v33 }
  0xbb   :  { %581 = vmatprep.subr.bf16.mxu0 %v818_v0 }
  0xbe   :  { %582 = vmatpush3.bf16.msra.mxu0 %v622_v34 }
 0x174   :  { %v222_v26 = vpop.f32.mrb[0].mxu0 }
 0x175   :  { %v223_v27 = vadd.f32 %v473_v25, %v222_v26  ;;  %v545_v28 = vpop.f32.mrb[1].mxu0 }
 0x176   :  { %v225_v29 = vpop.f32.mrb[2].mxu0 }
 0x177   :  { %v228_v30 = vmax.f32 %v223_v27, 0.0  ;;  %v546_v31 = vpop.f32.mrb[3].mxu0 }
 0x179   :  { %v229_v32 = vpack.c.bf16 %v228_v30, %v228_v30 }
 0x17b   :  { %564 = vmatmul.mubr.bf16.vlgmr.msra.gmra.mrb[0].mxu1 %v229_v32 }
 0x24e   :  { %v335_v36 = vpop.f32.mrb[0].mxu1 }
 0x24f   :  { %v336_v37 = vadd.f32 %v482_v35, %v335_v36  ;;  %v565_v38 = vpop.f32.mrb[1].mxu1 }
 0x250   :  { %v338_v39 = vpop.f32.mrb[2].mxu1 }
 0x251   :  { %v341_v40 = vmax.f32 %v336_v37, 0.0  ;;  %v566_v41 = vpop.f32.mrb[3].mxu1 }
 0x253   :  { %v342_v42 = vpack.c.bf16 %v341_v40, %v341_v40 }
 0x255   :  { %584 = vmatmul.mubr.bf16.vlgmr.msra.gmra.mrb[4].mxu0 %v342_v42 }
 0x328   :  { %v448_v44 = vpop.f32.mrb[4].mxu0 }
 0x329   :  { %v449_v45 = vadd.f32 %v491_v43, %v448_v44  ;;  %v585_v46 = vpop.f32.mrb[5].mxu0 }
 0x32a   :  { %v451_v47 = vpop.f32.mrb[6].mxu0 }
 0x32b   :  { %454 = vst [vmem:[#allocation14] sm:$0xff] %v449_v45  ;;  %v586_v48 = vpop.f32.mrb[7].mxu0 }
 0x32c   :  { %788 = shalt.err (!%p785_p4)
}
 0x32d   :  { %s789_s15 = scalar_lea.hbm %s1003_s7, 128 }
 0x32e   :  { %p790_p5 = scmp.ne.s32.totalorder %s1003_s7, %s789_s15  ;;  %p793_p6 = scmp.lt.u32.totalorder %s789_s15, %s1003_s7 }
 0x330   :  { %p795_p7 = pnand %p793_p6, %p790_p5 }
 0x332   :  { %798 = shalt.err (!%p795_p7)
}
 0x333   :  { %464 = dma.vmem_to_hbm [thread:$0]  %s462_s13, 128, %s1003_s7, [#allocation4]  }
 0x334   :  { %807 = dma.done.wait [#allocation4], 128  }
 0x335   :  { %808 = vsyncadd [#allocation4], 4294967168 }
 0x336   :  { %468 = vsyncpa [#allocation3], 1 }
 0x337   :  { %469 = vsyncpa [#allocation6], 1 }
 0x338   :  { %470 = vsyncpa [#allocation9], 1 }
 0x339   :  { %471 = vsyncpa [#allocation12], 1 }
 0x33a   :  { %472 = vsyncpa [#allocation4], 1 }

</bundles_post_ra>
